<compile_context>
chip_gen: v6e
topology: v6e:2x2x1
jax: 0.10.0
libtpu: 0.0.40
codegen_flags: <defaults>
</compile_context>

<pallas_src>
import functools

import jax
import jax.numpy as jnp
from jax.experimental import pallas as pl
from jax.experimental.pallas import tpu as pltpu

LANES = 128                       # lane width
SUBROWS = 8                       # sublanes per vreg tile
SUBTILE = SUBROWS * LANES         # 1024 elements per (8,128) sub-tile
MAX_SUBTILES_PER_BLOCK = 1024     # 4 MiB f32 per input per buffer per step
NUM_SHARDS = 2                    # v7x has 2 TensorCores; neutral on 1-TC chips
VMEM_LIMIT_BYTES = 40 << 20       # 16 MiB of buffers + headroom; < v7x's 64 MiB


def _iou_partial_kernel(t_ref, x_ref, out_ref, *, sub, n_tiles,
                        steps_per_shard, has_ragged):
    """Accumulate [sum(t*x), sum(t), sum(x)] element-wise into out_ref.

    out_ref is the per-shard VMEM-resident (1, 3, 8, 128) accumulator (same
    output block across the inner "arbitrary" grid axis).  The cross-lane
    reduction and the Tversky scalar math happen in the wrapper.
    """
    c = pl.program_id(0)          # shard (TensorCore) index
    i = pl.program_id(1)          # streaming step within the shard

    @pl.when(i == 0)
    def _init():
        out_ref[...] = jnp.zeros_like(out_ref)

    t = t_ref[...].astype(jnp.float32)        # (sub, 8, 128)
    x = x_ref[...].astype(jnp.float32)

    def _accum(tt, xx):
        out_ref[0, 0] += jnp.sum(tt * xx, axis=0)   # TP partial
        out_ref[0, 1] += jnp.sum(tt, axis=0)        # sum(targets) partial
        out_ref[0, 2] += jnp.sum(xx, axis=0)        # sum(inputs) partial

    if not has_ragged:
        _accum(t, x)
    else:
        global_block = c * steps_per_shard + i
        is_ragged = (global_block + 1) * sub > n_tiles

        @pl.when(jnp.logical_not(is_ragged))
        def _full():
            _accum(t, x)

        @pl.when(is_ragged)
        def _partial():
            # Zero sub-tiles beyond the logical array.  This covers both the
            # partially-filled last block and any duplicated clamp-read block
            # (whose sub-tile ids are all >= n_tiles -> contributes zero).
            ids = global_block * sub + jax.lax.broadcasted_iota(
                jnp.int32, t.shape, 0)
            valid = ids < n_tiles
            _accum(jnp.where(valid, t, 0.0), jnp.where(valid, x, 0.0))


def _as_stream_dtype(x):
    """Keep data narrow in HBM; widen to f32 on the VPU inside the kernel."""
    if x.dtype in (jnp.float32, jnp.bfloat16):
        return x
    if x.dtype == jnp.bool_:
        return x.astype(jnp.bfloat16)     # exact for {0,1} masks, half the bytes
    return x.astype(jnp.float32)          # other ints / wide floats: safe widening


def iou_loss(targets, inputs, alpha=0.5, beta=0.5, epsilon=1e-6):
    """JAX/Pallas equivalent of IoULoss.forward(targets, inputs)."""
    t_flat = _as_stream_dtype(jnp.ravel(targets))
    x_flat = _as_stream_dtype(jnp.ravel(inputs))

    n = t_flat.shape[0]
    if n == 0:
        return jnp.float32(0.0)           # TP = FP = FN = 0  ->  loss = 0

    aligned = (n // SUBTILE) * SUBTILE    # 1024-aligned prefix handled in-kernel
    n_tiles = aligned // SUBTILE

    tp = jnp.float32(0.0)
    sum_t = jnp.float32(0.0)
    sum_x = jnp.float32(0.0)

    if n_tiles > 0:
        t_main = t_flat if aligned == n else t_flat[:aligned]
        x_main = x_flat if aligned == n else x_flat[:aligned]
        t3 = t_main.reshape(n_tiles, SUBROWS, LANES)   # free for contiguous arrays
        x3 = x_main.reshape(n_tiles, SUBROWS, LANES)

        sub = min(MAX_SUBTILES_PER_BLOCK, n_tiles)     # sub-tiles per grid step
        n_blocks = -(-n_tiles // sub)                  # real streaming blocks
        shards = min(NUM_SHARDS, n_blocks)             # TensorCore shards
        steps_per_shard = -(-n_blocks // shards)
        total_blocks = shards * steps_per_shard
        has_ragged = total_blocks * sub > n_tiles      # static

        def in_index_map(c, i):
            # Clamp so trailing duplicate steps re-read the last real block
            # (their contribution is masked to zero in-kernel).
            return (jnp.minimum(c * steps_per_shard + i, n_blocks - 1), 0, 0)

        kernel = functools.partial(
            _iou_partial_kernel, sub=sub, n_tiles=n_tiles,
            steps_per_shard=steps_per_shard, has_ragged=has_ragged)

        partials = pl.pallas_call(
            kernel,
            out_shape=jax.ShapeDtypeStruct(
                (shards, 3, SUBROWS, LANES), jnp.float32),
            grid=(shards, steps_per_shard),
            in_specs=[
                pl.BlockSpec((sub, SUBROWS, LANES), in_index_map),
                pl.BlockSpec((sub, SUBROWS, LANES), in_index_map),
            ],
            out_specs=pl.BlockSpec(
                (1, 3, SUBROWS, LANES), lambda c, i: (c, 0, 0, 0)),
            compiler_params=pltpu.CompilerParams(
                dimension_semantics=("parallel", "arbitrary"),
                vmem_limit_bytes=VMEM_LIMIT_BYTES,
            ),
        )(t3, x3)

        sums = jnp.sum(partials, axis=(0, 2, 3))       # [sum(t*x), sum(t), sum(x)]
        tp, sum_t, sum_x = sums[0], sums[1], sums[2]

    if aligned != n:
        # < 1024-element remainder: tiny, handled in plain JAX (no big pad/copy).
        t_tail = t_flat[aligned:].astype(jnp.float32)
        x_tail = x_flat[aligned:].astype(jnp.float32)
        tp = tp + jnp.sum(t_tail * x_tail)
        sum_t = sum_t + jnp.sum(t_tail)
        sum_x = sum_x + jnp.sum(x_tail)

    fp = sum_x - tp                     # sum((1 - t) * x)
    fn = sum_t - tp                     # sum(t * (1 - x))
    iou = (tp + epsilon) / (tp + alpha * fp + beta * fn + epsilon)
    return 1.0 - iou


def iou_loss_ref(targets, inputs, alpha=0.5, beta=0.5, epsilon=1e-6):
    """Pure-JAX reference mirroring the PyTorch module."""
    x = jnp.ravel(inputs).astype(jnp.float32)
    t = jnp.ravel(targets).astype(jnp.float32)
    tp = jnp.sum(t * x)
    fp = jnp.sum((1.0 - t) * x)
    fn = jnp.sum(t * (1.0 - x))
    return 1.0 - (tp + epsilon) / (tp + alpha * fp + beta * fn + epsilon)


if __name__ == "__main__":
    key = jax.random.PRNGKey(0)
    k1, k2 = jax.random.split(key)

    # Small NCHW-shaped inputs: batch=2, channels=4, spatial=16x16 (2048 elems,
    # exactly 2 (8,128) sub-tiles -> aligned fast path).
    shape = (2, 4, 16, 16)
    inputs = jax.nn.sigmoid(jax.random.normal(k1, shape, dtype=jnp.float32))
    targets = (jax.random.uniform(k2, shape, dtype=jnp.float32) > 0.5).astype(
        jnp.float32)

    loss = jax.block_until_ready(iou_loss(targets, inputs))
    ref = iou_loss_ref(targets, inputs)
    assert jnp.allclose(loss, ref, rtol=1e-5, atol=1e-6), (loss, ref)

    # Ragged-size check: exercises the aligned-prefix kernel + jnp tail path.
    shape2 = (3, 5, 23, 17)   # 5865 elements = 5 full sub-tiles + 745-elem tail
    inputs2 = jax.nn.sigmoid(jax.random.normal(k1, shape2, dtype=jnp.float32))
    targets2 = (jax.random.uniform(k2, shape2, dtype=jnp.float32) > 0.5).astype(
        jnp.float32)
    loss2 = jax.block_until_ready(iou_loss(targets2, inputs2))
    ref2 = iou_loss_ref(targets2, inputs2)
    assert jnp.allclose(loss2, ref2, rtol=1e-5, atol=1e-6), (loss2, ref2)

    print("KERNEL_OK")
</pallas_src>

<mosaic_0001>
module attributes {stable_mosaic.version = 11 : i64} {
  func.func @_iou_partial_kernel(%arg0: i32, %arg1: i32, %arg2: memref<2x8x128xf32, #tpu.memory_space<vmem>>, %arg3: memref<2x8x128xf32, #tpu.memory_space<vmem>>, %arg4: memref<1x3x8x128xf32, #tpu.memory_space<vmem>>) attributes {dimension_semantics = [#tpu.dimension_semantics<parallel>, #tpu.dimension_semantics<arbitrary>], iteration_bounds = array<i64: 1, 1>, scalar_prefetch = 0 : i64, scratch_operands = 0 : i64, tpu.core_type = #tpu.core_type<tc>, window_params = [{transform_indices = @transform_0, window_bounds = array<i64: 2, 8, 128>}, {transform_indices = @transform_1, window_bounds = array<i64: 2, 8, 128>}, {transform_indices = @transform_2, window_bounds = array<i64: 1, 3, 8, 128>}]} {
    %c0_i32 = arith.constant 0 : i32
    %0 = arith.cmpi eq, %arg1, %c0_i32 : i32
    %1 = arith.extui %0 : i1 to i32
    %c0_i32_0 = arith.constant 0 : i32
    %2 = arith.cmpi ne, %1, %c0_i32_0 : i32
    scf.if %2 {
      %cst_30 = arith.constant 0.000000e+00 : f32
      %27 = vector.broadcast %cst_30 : f32 to vector<1x3x8x128xf32>
      %c0_31 = arith.constant 0 : index
      %c0_32 = arith.constant 0 : index
      %c0_33 = arith.constant 0 : index
      %c0_34 = arith.constant 0 : index
      %28 = vector.load %arg4[%c0_31, %c0_32, %c0_33, %c0_34] : memref<1x3x8x128xf32, #tpu.memory_space<vmem>>, vector<1x3x8x128xf32>
      tpu.vector_store %arg4[%c0_31, %c0_32, %c0_33, %c0_34], %27 {strides = array<i32>} : memref<1x3x8x128xf32, #tpu.memory_space<vmem>>, vector<1x3x8x128xf32>,
    } else {
    }
    %c0 = arith.constant 0 : index
    %c0_1 = arith.constant 0 : index
    %c0_2 = arith.constant 0 : index
    %3 = vector.load %arg2[%c0, %c0_1, %c0_2] : memref<2x8x128xf32, #tpu.memory_space<vmem>>, vector<2x8x128xf32>
    %c0_3 = arith.constant 0 : index
    %c0_4 = arith.constant 0 : index
    %c0_5 = arith.constant 0 : index
    %4 = vector.load %arg3[%c0_3, %c0_4, %c0_5] : memref<2x8x128xf32, #tpu.memory_space<vmem>>, vector<2x8x128xf32>
    %c0_6 = arith.constant 0 : index
    %c0_7 = arith.constant 0 : index
    %c0_8 = arith.constant 0 : index
    %c0_9 = arith.constant 0 : index
    %5 = vector.load %arg4[%c0_6, %c0_7, %c0_8, %c0_9] : memref<1x3x8x128xf32, #tpu.memory_space<vmem>>, vector<1x1x8x128xf32>
    %6 = vector.shape_cast %5 : vector<1x1x8x128xf32> to vector<8x128xf32>
    %7 = arith.mulf %3, %4 : vector<2x8x128xf32>
    %cst = arith.constant dense<0.000000e+00> : vector<8x128xf32>
    %8 = vector.multi_reduction <add>, %7, %cst [0] : vector<2x8x128xf32> to vector<8x128xf32>
    %9 = arith.addf %6, %8 : vector<8x128xf32>
    %c0_10 = arith.constant 0 : index
    %c0_11 = arith.constant 0 : index
    %c0_12 = arith.constant 0 : index
    %c0_13 = arith.constant 0 : index
    %10 = vector.load %arg4[%c0_10, %c0_11, %c0_12, %c0_13] : memref<1x3x8x128xf32, #tpu.memory_space<vmem>>, vector<1x1x8x128xf32>
    %11 = vector.shape_cast %10 : vector<1x1x8x128xf32> to vector<8x128xf32>
    %12 = vector.shape_cast %9 : vector<8x128xf32> to vector<1x1x8x128xf32>
    tpu.vector_store %arg4[%c0_10, %c0_11, %c0_12, %c0_13], %12 {strides = array<i32>} : memref<1x3x8x128xf32, #tpu.memory_space<vmem>>, vector<1x1x8x128xf32>,
    %c0_14 = arith.constant 0 : index
    %c1 = arith.constant 1 : index
    %c0_15 = arith.constant 0 : index
    %c0_16 = arith.constant 0 : index
    %13 = vector.load %arg4[%c0_14, %c1, %c0_15, %c0_16] : memref<1x3x8x128xf32, #tpu.memory_space<vmem>>, vector<1x1x8x128xf32>
    %14 = vector.shape_cast %13 : vector<1x1x8x128xf32> to vector<8x128xf32>
    %cst_17 = arith.constant dense<0.000000e+00> : vector<8x128xf32>
    %15 = vector.multi_reduction <add>, %3, %cst_17 [0] : vector<2x8x128xf32> to vector<8x128xf32>
    %16 = arith.addf %14, %15 : vector<8x128xf32>
    %c0_18 = arith.constant 0 : index
    %c1_19 = arith.constant 1 : index
    %c0_20 = arith.constant 0 : index
    %c0_21 = arith.constant 0 : index
    %17 = vector.load %arg4[%c0_18, %c1_19, %c0_20, %c0_21] : memref<1x3x8x128xf32, #tpu.memory_space<vmem>>, vector<1x1x8x128xf32>
    %18 = vector.shape_cast %17 : vector<1x1x8x128xf32> to vector<8x128xf32>
    %19 = vector.shape_cast %16 : vector<8x128xf32> to vector<1x1x8x128xf32>
    tpu.vector_store %arg4[%c0_18, %c1_19, %c0_20, %c0_21], %19 {strides = array<i32>} : memref<1x3x8x128xf32, #tpu.memory_space<vmem>>, vector<1x1x8x128xf32>,
    %c0_22 = arith.constant 0 : index
    %c2 = arith.constant 2 : index
    %c0_23 = arith.constant 0 : index
    %c0_24 = arith.constant 0 : index
    %20 = vector.load %arg4[%c0_22, %c2, %c0_23, %c0_24] : memref<1x3x8x128xf32, #tpu.memory_space<vmem>>, vector<1x1x8x128xf32>
    %21 = vector.shape_cast %20 : vector<1x1x8x128xf32> to vector<8x128xf32>
    %cst_25 = arith.constant dense<0.000000e+00> : vector<8x128xf32>
    %22 = vector.multi_reduction <add>, %4, %cst_25 [0] : vector<2x8x128xf32> to vector<8x128xf32>
    %23 = arith.addf %21, %22 : vector<8x128xf32>
    %c0_26 = arith.constant 0 : index
    %c2_27 = arith.constant 2 : index
    %c0_28 = arith.constant 0 : index
    %c0_29 = arith.constant 0 : index
    %24 = vector.load %arg4[%c0_26, %c2_27, %c0_28, %c0_29] : memref<1x3x8x128xf32, #tpu.memory_space<vmem>>, vector<1x1x8x128xf32>
    %25 = vector.shape_cast %24 : vector<1x1x8x128xf32> to vector<8x128xf32>
    %26 = vector.shape_cast %23 : vector<8x128xf32> to vector<1x1x8x128xf32>
    tpu.vector_store %arg4[%c0_26, %c2_27, %c0_28, %c0_29], %26 {strides = array<i32>} : memref<1x3x8x128xf32, #tpu.memory_space<vmem>>, vector<1x1x8x128xf32>,
    return
  }
  func.func @transform_0(%arg0: i32, %arg1: i32) -> (i32, i32, i32) {
    %c1_i32 = arith.constant 1 : i32
    %0 = arith.muli %arg0, %c1_i32 : i32
    %1 = arith.addi %0, %arg1 : i32
    %c0_i32 = arith.constant 0 : i32
    %2 = arith.minsi %1, %c0_i32 : i32
    %c0_i32_0 = arith.constant 0 : i32
    %c0_i32_1 = arith.constant 0 : i32
    %c0_i32_2 = arith.constant 0 : i32
    return %2, %c0_i32_0, %c0_i32_1 : i32, i32, i32
  }
  func.func @transform_1(%arg0: i32, %arg1: i32) -> (i32, i32, i32) {
    %c1_i32 = arith.constant 1 : i32
    %0 = arith.muli %arg0, %c1_i32 : i32
    %1 = arith.addi %0, %arg1 : i32
    %c0_i32 = arith.constant 0 : i32
    %2 = arith.minsi %1, %c0_i32 : i32
    %c0_i32_0 = arith.constant 0 : i32
    %c0_i32_1 = arith.constant 0 : i32
    %c0_i32_2 = arith.constant 0 : i32
    return %2, %c0_i32_0, %c0_i32_1 : i32, i32, i32
  }
  func.func @transform_2(%arg0: i32, %arg1: i32) -> (i32, i32, i32, i32) {
    %c0_i32 = arith.constant 0 : i32
    %c0_i32_0 = arith.constant 0 : i32
    %c0_i32_1 = arith.constant 0 : i32
    %c0_i32_2 = arith.constant 0 : i32
    return %arg0, %c0_i32, %c0_i32_0, %c0_i32_1 : i32, i32, i32, i32
  }
}

</mosaic_0001>

<bundles_post_ra>
// kernel: tpu_custom_call.1
= control target key start
LH: loop header
LB: loop body
LE: loop exit
PB: predicated region body
PF: predicated region fallthrough
CT: control target
= control target key end

     0   :  { %7 = vsyncpa [#allocation3], 0  ;;  %s219_s0 = inlined_call_operand.hbm [shape: f32[2,8,128], index: 0, kind: input, shape index: {}]   ;;  %s220_s1 = inlined_call_operand.hbm [shape: f32[2,8,128], index: 1, kind: input, shape index: {}]   ;;  %s221_s2 = inlined_call_operand.hbm [shape: f32[1,3,8,128], index: 2, kind: output, shape index: {}]  }
   0x1   :  { %8 = vsyncpa [#allocation6], 0 }
   0x2   :  { %9 = vsyncpa [#allocation4], 0  ;;  %s181_s9 = smov [#allocation2]  }
   0x3   :  { %s21_s10 = sshll.u32 %s181_s9, 4  ;;  %s22_s10 = int_to_ptr.vmem [resolvable:$true] %s21_s10 }
   0x4   :  { %s123_s11 = scalar_lea.vmem %s22_s10, 256  ;;  %p128_p1 = scmp.lt.s32.totalorder %s22_s10, %s22_s10 }
   0x5   :  { %p124_p0 = scmp.ne.s32.totalorder %s22_s10, %s123_s11  ;;  %p129_p2 = scmp.lt.s32.totalorder %s123_s11, %s123_s11 }
   0x7   :  { %p130_p3 = por %p129_p2, %p128_p1 }
   0x9   :  { %p131_p4 = pnand %p130_p3, %p124_p0 }
   0xb   :  { %134 = shalt.err (!%p131_p4)
}
   0xc   :  { %s182_s12 = smov 128   ;;  %s183_s13 = smov 8  }
   0xd   :  { %27 = dma.hbm_to_vmem [thread:$0]  %s219_s0, 256, %s22_s10, [#allocation3], %s182_s12, %s182_s12, %s183_s13  }
   0xe   :  { %s184_s16 = smov [#allocation5]  }
   0xf   :  { %s39_s17 = sshll.u32 %s184_s16, 4  ;;  %s40_s17 = int_to_ptr.vmem [resolvable:$true] %s39_s17 }
  0x10   :  { %s143_s18 = scalar_lea.vmem %s40_s17, 256  ;;  %p148_p6 = scmp.lt.s32.totalorder %s40_s17, %s40_s17 }
  0x11   :  { %p144_p5 = scmp.ne.s32.totalorder %s40_s17, %s143_s18  ;;  %p149_p7 = scmp.lt.s32.totalorder %s143_s18, %s143_s18 }
  0x13   :  { %p150_p8 = por %p149_p7, %p148_p6 }
  0x15   :  { %p151_p9 = pnand %p150_p8, %p144_p5 }
  0x17   :  { %154 = shalt.err (!%p151_p9)
}
  0x18   :  { %45 = dma.hbm_to_vmem [thread:$0]  %s220_s1, 256, %s40_s17, [#allocation6], %s182_s12, %s182_s12, %s183_s13  }
  0x19   :  { %175 = dma.done.wait [#allocation3], 256  }
  0x1a   :  { %176 = vsyncadd [#allocation3], 4294967040 }
  0x1b   :  { %177 = dma.done.wait [#allocation6], 256  }
  0x1c   :  { %178 = vsyncadd [#allocation6], 4294967040  ;;  %v67_v0 = vld [vmem:[#allocation2] sm:$0xff]  ;;  %v68_v1 = vld [vmem:[#allocation2 + $0x8] sm:$0xff]  ;;  %s185_s0 = smov [#allocation7]  }
  0x1d   :  { %v69_v2 = vld [vmem:[#allocation5] sm:$0xff]  ;;  %v70_v3 = vld [vmem:[#allocation5 + $0x8] sm:$0xff]  ;;  %v79_v5 = vadd.f32 %v68_v1, %v67_v0  ;;  %s92_s21 = sshll.u32 %s185_s0, 4  ;;  %s93_s21 = int_to_ptr.vmem [resolvable:$true] %s92_s21 }
  0x1e   :  { %v72_v4 = vmul.f32 %v69_v2, %v67_v0  ;;  %v73_v6 = vmul.f32 %v70_v3, %v68_v1  ;;  %v84_v7 = vadd.f32 %v70_v3, %v69_v2  ;;  %s155_s1 = scalar_lea.vmem %s93_s21, 384  ;;  %p160_p11 = scmp.lt.s32.totalorder %s93_s21, %s93_s21 }
  0x1f   :  { %81 = vst [vmem:[#allocation7 + $0x8] sm:$0xff] %v79_v5  ;;  %p156_p10 = scmp.ne.s32.totalorder %s93_s21, %s155_s1  ;;  %p161_p12 = scmp.lt.s32.totalorder %s155_s1, %s155_s1 }
  0x20   :  { %v74_v8 = vadd.f32 %v73_v6, %v72_v4  ;;  %86 = vst [vmem:[#allocation7 + $0x10] sm:$0xff] %v84_v7 }
  0x21   :  { %p162_p13 = por %p161_p12, %p160_p11 }
  0x22   :  { %76 = vst [vmem:[#allocation7] sm:$0xff] %v74_v8 }
  0x23   :  { %p163_p0 = pnand %p162_p13, %p156_p10 }
  0x25   :  { %166 = shalt.err (!%p163_p0)
}
  0x26   :  { %98 = dma.vmem_to_hbm [thread:$0]  %s93_s21, 384, %s221_s2, [#allocation4], %s182_s12, %s182_s12, %s183_s13  }
  0x27   :  { %179 = dma.done.wait [#allocation4], 384  }
  0x28   :  { %180 = vsyncadd [#allocation4], 4294966912 }
  0x29   :  { %102 = vsyncpa [#allocation3], 1 }
  0x2a   :  { %103 = vsyncpa [#allocation6], 1 }
  0x2b   :  { %104 = vsyncpa [#allocation4], 1 }

</bundles_post_ra>
